<compile_context>
chip_gen: v7x
topology: tpu7x:2x2x1
jax: 0.10.0
libtpu: 0.0.40
codegen_flags: <defaults>
</compile_context>

<pallas_src>
import functools

import jax
import jax.numpy as jnp
from jax import lax
from jax.experimental import pallas as pl
from jax.experimental.pallas import tpu as pltpu

_EPS = 1e-12          # matches F.normalize(p=2, dim=1) eps
_NEG_BIG = -1e30      # "minus infinity" that stays NaN-safe under exp/max


def _cdc_kernel(fs_ref, ftT_ref, ls_ref, lt_ref, cv_ref,
                loss_ref, npos_ref,
                scale_s_sc, m_sc, l_sc, np_sc, rs_sc,
                *, temperature, scale_by_temperature):
    kp = pl.program_id(1)

    @pl.when(kp == 0)
    def _init():
        fs32 = fs_ref[...].astype(jnp.float32)
        row_sumsq = jnp.sum(fs32 * fs32, axis=1, keepdims=True)       # (TB, 1)
        # x / max(||x||, eps) == x * rsqrt(max(||x||^2, eps^2)); fold 1/T in.
        scale_s_sc[...] = (lax.rsqrt(jnp.maximum(row_sumsq, _EPS * _EPS))
                           * jnp.float32(1.0 / temperature))
        m_sc[...] = jnp.full(m_sc.shape, _NEG_BIG, jnp.float32)
        l_sc[...] = jnp.zeros_like(l_sc)
        np_sc[...] = jnp.zeros_like(np_sc)
        rs_sc[...] = jnp.zeros_like(rs_sc)

    ft_t = ftT_ref[...]                                               # (H, TP), native dtype
    ft32 = ft_t.astype(jnp.float32)
    col_sumsq = jnp.sum(ft32 * ft32, axis=0, keepdims=True)           # (1, TP)
    inv_t = lax.rsqrt(jnp.maximum(col_sumsq, _EPS * _EPS))            # (1, TP)

    # MXU matmul on native-dtype operands, f32 accumulation.  Normalization and
    # 1/temperature become rank-1 broadcast multiplies on the f32 result.
    sims = jnp.dot(fs_ref[...], ft_t, preferred_element_type=jnp.float32)
    z = sims * scale_s_sc[...] * inv_t                                # raw logits (TB, TP)

    col_ok = cv_ref[...] > 0.5                                        # (1, TP)
    pos = jnp.logical_and(ls_ref[...] == lt_ref[...], col_ok)         # (TB, TP)
    mask = pos.astype(jnp.float32)

    np_sc[...] += jnp.sum(mask, axis=1, keepdims=True)
    rs_sc[...] += jnp.sum(jnp.where(pos, z, 0.0), axis=1, keepdims=True)

    # Online logsumexp over the streamed P axis (padded columns excluded).
    z_lse = jnp.where(col_ok, z, _NEG_BIG)
    m_new = jnp.maximum(m_sc[...], jnp.max(z_lse, axis=1, keepdims=True))
    alpha = jnp.exp(m_sc[...] - m_new)
    l_sc[...] = alpha * l_sc[...] + jnp.sum(jnp.exp(z_lse - m_new),
                                            axis=1, keepdims=True)
    m_sc[...] = m_new

    @pl.when(kp == pl.num_programs(1) - 1)
    def _finalize():
        num_pos = np_sc[...]
        log_denom = m_sc[...] + jnp.log(l_sc[...])                    # logsumexp per row
        # sum(log_probs * mask) = sum(raw * mask) - num_pos * logsumexp(raw)
        pos_log_sum = rs_sc[...] - num_pos * log_denom
        safe = jnp.maximum(num_pos, 1.0)
        per_row = -(pos_log_sum / safe)
        if scale_by_temperature:
            per_row = per_row * jnp.float32(temperature)
        loss_ref[...] = per_row
        npos_ref[...] = num_pos


def _round_up(x, m):
    return ((x + m - 1) // m) * m


def cdc_source_anchor(feature_s, feature_t, label_s, label_t,
                      temperature=0.1, scale_by_temperature=True,
                      tb_max=256, tp_max=1024):
    """Pallas implementation of CDCSourceAnchor.forward. Returns a scalar."""
    B, H = feature_s.shape
    P, H2 = feature_t.shape
    if H != H2:
        raise ValueError('hidden dims of feature_s / feature_t differ')
    if label_s.shape[0] != B or label_t.shape[0] != P:
        raise ValueError('Num of labels does not match num of features')

    # Keep MXU operands in their native (promoted) dtype: no forced f32 upcast.
    cdt = jnp.promote_types(feature_s.dtype, feature_t.dtype)
    fs = feature_s.astype(cdt)
    ftT = feature_t.T.astype(cdt)                     # (H, P): P on the lane axis
    ls = label_s.reshape(B, 1).astype(jnp.int32)
    lt = label_t.reshape(1, P).astype(jnp.int32)

    # Tile selection: B is split (parallel) in tiles of up to tb_max rows;
    # P is streamed (arbitrary) in lane-aligned tiles of up to tp_max columns.
    if B <= tb_max:
        TB, B_pad = B, B
    else:
        TB = tb_max
        B_pad = _round_up(B, TB)
    if P <= tp_max:
        TP, P_pad = P, P
    else:
        TP = tp_max
        P_pad = _round_up(P, TP)

    col_valid = jnp.ones((1, P), jnp.float32)
    if B_pad > B:
        fs = jnp.pad(fs, ((0, B_pad - B), (0, 0)))
        ls = jnp.pad(ls, ((0, B_pad - B), (0, 0)), constant_values=-1)
    if P_pad > P:
        ftT = jnp.pad(ftT, ((0, 0), (0, P_pad - P)))
        lt = jnp.pad(lt, ((0, 0), (0, P_pad - P)), constant_values=-1)
        col_valid = jnp.pad(col_valid, ((0, 0), (0, P_pad - P)))

    n_b = B_pad // TB
    n_p = P_pad // TP

    kernel = functools.partial(
        _cdc_kernel,
        temperature=float(temperature),
        scale_by_temperature=bool(scale_by_temperature))

    grid_spec = pltpu.PrefetchScalarGridSpec(
        num_scalar_prefetch=0,
        grid=(n_b, n_p),
        in_specs=[
            pl.BlockSpec((TB, H), lambda ib, kp: (ib, 0)),   # feature_s tile
            pl.BlockSpec((H, TP), lambda ib, kp: (0, kp)),   # feature_t^T tile
            pl.BlockSpec((TB, 1), lambda ib, kp: (ib, 0)),   # label_s
            pl.BlockSpec((1, TP), lambda ib, kp: (0, kp)),   # label_t
            pl.BlockSpec((1, TP), lambda ib, kp: (0, kp)),   # column-valid mask
        ],
        out_specs=[
            pl.BlockSpec((TB, 1), lambda ib, kp: (ib, 0)),   # per-row loss
            pl.BlockSpec((TB, 1), lambda ib, kp: (ib, 0)),   # per-row num_pos
        ],
        scratch_shapes=[
            pltpu.VMEM((TB, 1), jnp.float32),   # scale_s = rsqrt(||fs||^2)/T
            pltpu.VMEM((TB, 1), jnp.float32),   # running max
            pltpu.VMEM((TB, 1), jnp.float32),   # running sum-exp
            pltpu.VMEM((TB, 1), jnp.float32),   # running num_pos
            pltpu.VMEM((TB, 1), jnp.float32),   # running sum(raw_logits * mask)
        ],
    )

    itemsize = jnp.dtype(cdt).itemsize
    cost = pl.CostEstimate(
        flops=int(2 * B_pad * P_pad * H + 6 * B_pad * P_pad),
        transcendentals=int(B_pad * P_pad + B_pad + P_pad),
        bytes_accessed=int((B_pad * H + n_b * P_pad * H) * itemsize
                           + (B_pad + n_b * P_pad) * 4 + 2 * B_pad * 4))

    loss_rows, num_pos = pl.pallas_call(
        kernel,
        out_shape=(jax.ShapeDtypeStruct((B_pad, 1), jnp.float32),
                   jax.ShapeDtypeStruct((B_pad, 1), jnp.float32)),
        grid_spec=grid_spec,
        compiler_params=pltpu.CompilerParams(
            dimension_semantics=("parallel", "arbitrary"),
            vmem_limit_bytes=64 * 1024 * 1024),
        cost_estimate=cost,
    )(fs, ftT, ls, lt, col_valid)

    # Tiny epilogue in plain JAX: mean over rows with at least one positive.
    loss_rows = loss_rows[:B, 0]
    num_pos = num_pos[:B, 0]
    valid = num_pos > 0.0
    count = jnp.sum(valid.astype(jnp.float32))
    total = jnp.sum(jnp.where(valid, loss_rows, 0.0))
    # TODO(synk): the PyTorch module raises on NaN log_probs at runtime; a
    # data-dependent host-side raise has no clean Pallas equivalent.
    return total / count   # NaN when no row has a positive (matches torch mean of empty)


def _reference(feature_s, feature_t, label_s, label_t,
               temperature=0.1, scale_by_temperature=True):
    """Pure-JAX reference mirroring the PyTorch forward (for sanity check)."""
    eps = 1e-12
    fs = feature_s / jnp.maximum(
        jnp.linalg.norm(feature_s, axis=1, keepdims=True), eps)
    ft = feature_t / jnp.maximum(
        jnp.linalg.norm(feature_t, axis=1, keepdims=True), eps)
    mask = (label_s[:, None] == label_t[None, :]).astype(jnp.float32)
    logits = fs @ ft.T / temperature
    logits = logits - jnp.max(logits, axis=1, keepdims=True)
    exp_logits = jnp.exp(logits)
    denom = jnp.sum(exp_logits, axis=1, keepdims=True)
    log_probs = logits - jnp.log(denom)
    num_pos = jnp.sum(mask, axis=1)
    pos_sum = jnp.sum(log_probs * mask, axis=1)
    valid = num_pos > 0
    per_row = pos_sum[valid] / num_pos[valid]
    loss = -per_row
    if scale_by_temperature:
        loss = loss * temperature
    return jnp.mean(loss)


if __name__ == "__main__":
    key = jax.random.PRNGKey(0)

    # --- Test 1: small shapes (single tile) -------------------------------
    k1, k2, k3, k4 = jax.random.split(key, 4)
    B, P, H = 8, 16, 32          # batch_size, pseudo_size, hidden_dim
    n_classes = 4

    feature_s = jax.random.normal(k1, (B, H), dtype=jnp.float32)
    feature_t = jax.random.normal(k2, (P, H), dtype=jnp.float32)
    label_s = jax.random.randint(k3, (B,), 0, n_classes, dtype=jnp.int32)
    label_t = jax.random.randint(k4, (P,), 0, n_classes, dtype=jnp.int32)

    loss = cdc_source_anchor(feature_s, feature_t, label_s, label_t,
                             temperature=0.1, scale_by_temperature=True)
    loss = jax.block_until_ready(loss)
    ref = _reference(feature_s, feature_t, label_s, label_t,
                     temperature=0.1, scale_by_temperature=True)
    assert jnp.allclose(loss, ref, rtol=1e-4, atol=1e-4), (loss, ref)

    # --- Test 2: multi-tile path (B and P split + padding) -----------------
    k5, k6, k7, k8 = jax.random.split(jax.random.PRNGKey(0), 4)
    B2, P2, H2 = 200, 700, 64
    n_classes2 = 5
    fs2 = jax.random.normal(k5, (B2, H2), dtype=jnp.float32)
    ft2 = jax.random.normal(k6, (P2, H2), dtype=jnp.float32)
    ls2 = jax.random.randint(k7, (B2,), 0, n_classes2, dtype=jnp.int32)
    lt2 = jax.random.randint(k8, (P2,), 0, n_classes2, dtype=jnp.int32)

    loss2 = cdc_source_anchor(fs2, ft2, ls2, lt2,
                              temperature=0.1, scale_by_temperature=True,
                              tb_max=128, tp_max=256)
    loss2 = jax.block_until_ready(loss2)
    ref2 = _reference(fs2, ft2, ls2, lt2,
                      temperature=0.1, scale_by_temperature=True)
    assert jnp.allclose(loss2, ref2, rtol=2e-3, atol=2e-3), (loss2, ref2)

    print("KERNEL_OK")
</pallas_src>

<mosaic_0001>
module attributes {stable_mosaic.version = 11 : i64} {
  func.func @_cdc_kernel(%arg0: i32, %arg1: i32, %arg2: memref<8x32xf32, #tpu.memory_space<vmem>>, %arg3: memref<32x16xf32, #tpu.memory_space<vmem>>, %arg4: memref<8x1xi32, #tpu.memory_space<vmem>>, %arg5: memref<1x16xi32, #tpu.memory_space<vmem>>, %arg6: memref<1x16xf32, #tpu.memory_space<vmem>>, %arg7: memref<8x1xf32, #tpu.memory_space<vmem>>, %arg8: memref<8x1xf32, #tpu.memory_space<vmem>>, %arg9: memref<8x1xf32, #tpu.memory_space<vmem>>, %arg10: memref<8x1xf32, #tpu.memory_space<vmem>>, %arg11: memref<8x1xf32, #tpu.memory_space<vmem>>, %arg12: memref<8x1xf32, #tpu.memory_space<vmem>>, %arg13: memref<8x1xf32, #tpu.memory_space<vmem>>) attributes {dimension_semantics = [#tpu.dimension_semantics<parallel>, #tpu.dimension_semantics<arbitrary>], iteration_bounds = array<i64: 1, 1>, scalar_prefetch = 0 : i64, scratch_operands = 5 : i64, tpu.core_type = #tpu.core_type<tc>, window_params = [{transform_indices = @transform_0, window_bounds = array<i64: 8, 32>}, {transform_indices = @transform_1, window_bounds = array<i64: 32, 16>}, {transform_indices = @transform_2, window_bounds = array<i64: 8, 1>}, {transform_indices = @transform_3, window_bounds = array<i64: 1, 16>}, {transform_indices = @transform_4, window_bounds = array<i64: 1, 16>}, {transform_indices = @transform_5, window_bounds = array<i64: 8, 1>}, {transform_indices = @transform_6, window_bounds = array<i64: 8, 1>}]} {
    %c0_i32 = arith.constant 0 : i32
    %0 = arith.cmpi eq, %arg1, %c0_i32 : i32
    %1 = arith.extui %0 : i1 to i32
    %c0_i32_0 = arith.constant 0 : i32
    %2 = arith.cmpi ne, %1, %c0_i32_0 : i32
    scf.if %2 {
      %c0_41 = arith.constant 0 : index
      %c0_42 = arith.constant 0 : index
      %65 = vector.load %arg2[%c0_41, %c0_42] : memref<8x32xf32, #tpu.memory_space<vmem>>, vector<8x32xf32>
      %66 = arith.mulf %65, %65 : vector<8x32xf32>
      %cst_43 = arith.constant dense<0.000000e+00> : vector<8xf32>
      %67 = vector.multi_reduction <add>, %66, %cst_43 [1] : vector<8x32xf32> to vector<8xf32>
      %68 = vector.shape_cast %67 : vector<8xf32> to vector<8x1xf32>
      %cst_44 = arith.constant 1.000000e-24 : f32
      %69 = vector.broadcast %cst_44 : f32 to vector<8x1xf32>
      %70 = arith.maximumf %68, %69 : vector<8x1xf32>
      %71 = math.rsqrt %70 : vector<8x1xf32>
      %cst_45 = arith.constant 1.000000e+01 : f32
      %72 = vector.broadcast %cst_45 : f32 to vector<8x1xf32>
      %73 = arith.mulf %71, %72 : vector<8x1xf32>
      %c0_46 = arith.constant 0 : index
      %c0_47 = arith.constant 0 : index
      %74 = vector.load %arg9[%c0_46, %c0_47] : memref<8x1xf32, #tpu.memory_space<vmem>>, vector<8x1xf32>
      tpu.vector_store %arg9[%c0_46, %c0_47], %73 {strides = array<i32>} : memref<8x1xf32, #tpu.memory_space<vmem>>, vector<8x1xf32>,
      %cst_48 = arith.constant -1.000000e+30 : f32
      %75 = vector.broadcast %cst_48 : f32 to vector<8x1xf32>
      %c0_49 = arith.constant 0 : index
      %c0_50 = arith.constant 0 : index
      %76 = vector.load %arg10[%c0_49, %c0_50] : memref<8x1xf32, #tpu.memory_space<vmem>>, vector<8x1xf32>
      tpu.vector_store %arg10[%c0_49, %c0_50], %75 {strides = array<i32>} : memref<8x1xf32, #tpu.memory_space<vmem>>, vector<8x1xf32>,
      %cst_51 = arith.constant 0.000000e+00 : f32
      %77 = vector.broadcast %cst_51 : f32 to vector<8x1xf32>
      %c0_52 = arith.constant 0 : index
      %c0_53 = arith.constant 0 : index
      %78 = vector.load %arg11[%c0_52, %c0_53] : memref<8x1xf32, #tpu.memory_space<vmem>>, vector<8x1xf32>
      tpu.vector_store %arg11[%c0_52, %c0_53], %77 {strides = array<i32>} : memref<8x1xf32, #tpu.memory_space<vmem>>, vector<8x1xf32>,
      %cst_54 = arith.constant 0.000000e+00 : f32
      %79 = vector.broadcast %cst_54 : f32 to vector<8x1xf32>
      %c0_55 = arith.constant 0 : index
      %c0_56 = arith.constant 0 : index
      %80 = vector.load %arg12[%c0_55, %c0_56] : memref<8x1xf32, #tpu.memory_space<vmem>>, vector<8x1xf32>
      tpu.vector_store %arg12[%c0_55, %c0_56], %79 {strides = array<i32>} : memref<8x1xf32, #tpu.memory_space<vmem>>, vector<8x1xf32>,
      %cst_57 = arith.constant 0.000000e+00 : f32
      %81 = vector.broadcast %cst_57 : f32 to vector<8x1xf32>
      %c0_58 = arith.constant 0 : index
      %c0_59 = arith.constant 0 : index
      %82 = vector.load %arg13[%c0_58, %c0_59] : memref<8x1xf32, #tpu.memory_space<vmem>>, vector<8x1xf32>
      tpu.vector_store %arg13[%c0_58, %c0_59], %81 {strides = array<i32>} : memref<8x1xf32, #tpu.memory_space<vmem>>, vector<8x1xf32>,
    } else {
    }
    %c0 = arith.constant 0 : index
    %c0_1 = arith.constant 0 : index
    %3 = vector.load %arg3[%c0, %c0_1] : memref<32x16xf32, #tpu.memory_space<vmem>>, vector<32x16xf32>
    %4 = arith.mulf %3, %3 : vector<32x16xf32>
    %cst = arith.constant dense<0.000000e+00> : vector<16xf32>
    %5 = vector.multi_reduction <add>, %4, %cst [0] : vector<32x16xf32> to vector<16xf32>
    %6 = vector.shape_cast %5 : vector<16xf32> to vector<1x16xf32>
    %cst_2 = arith.constant 1.000000e-24 : f32
    %7 = vector.broadcast %cst_2 : f32 to vector<1x16xf32>
    %8 = arith.maximumf %6, %7 : vector<1x16xf32>
    %9 = math.rsqrt %8 : vector<1x16xf32>
    %c0_3 = arith.constant 0 : index
    %c0_4 = arith.constant 0 : index
    %10 = vector.load %arg2[%c0_3, %c0_4] : memref<8x32xf32, #tpu.memory_space<vmem>>, vector<8x32xf32>
    %cst_5 = arith.constant dense<0.000000e+00> : vector<8x16xf32>
    %11 = tpu.matmul %10, %3, %cst_5 {dimension_numbers = #tpu.dot_dimension_numbers<[1], [0], [0], [1], [0, 0, 1, 1], [], []>} : vector<8x32xf32>, vector<32x16xf32>, vector<8x16xf32> -> vector<8x16xf32>
    %c0_6 = arith.constant 0 : index
    %c0_7 = arith.constant 0 : index
    %12 = vector.load %arg9[%c0_6, %c0_7] : memref<8x1xf32, #tpu.memory_space<vmem>>, vector<8x1xf32>
    %13 = vector.broadcast %12 : vector<8x1xf32> to vector<8x16xf32>
    %14 = arith.mulf %11, %13 : vector<8x16xf32>
    %15 = vector.broadcast %9 : vector<1x16xf32> to vector<8x16xf32>
    %16 = arith.mulf %14, %15 : vector<8x16xf32>
    %c0_8 = arith.constant 0 : index
    %c0_9 = arith.constant 0 : index
    %17 = vector.load %arg6[%c0_8, %c0_9] : memref<1x16xf32, #tpu.memory_space<vmem>>, vector<1x16xf32>
    %cst_10 = arith.constant 5.000000e-01 : f32
    %18 = vector.broadcast %cst_10 : f32 to vector<1x16xf32>
    %19 = arith.cmpf ogt, %17, %18 : vector<1x16xf32>
    %c0_11 = arith.constant 0 : index
    %c0_12 = arith.constant 0 : index
    %20 = vector.load %arg4[%c0_11, %c0_12] : memref<8x1xi32, #tpu.memory_space<vmem>>, vector<8x1xi32>
    %c0_13 = arith.constant 0 : index
    %c0_14 = arith.constant 0 : index
    %21 = vector.load %arg5[%c0_13, %c0_14] : memref<1x16xi32, #tpu.memory_space<vmem>>, vector<1x16xi32>
    %22 = vector.broadcast %20 : vector<8x1xi32> to vector<8x16xi32>
    %23 = vector.broadcast %21 : vector<1x16xi32> to vector<8x16xi32>
    %24 = arith.cmpi eq, %22, %23 : vector<8x16xi32>
    %25 = vector.broadcast %19 : vector<1x16xi1> to vector<8x16xi1>
    %26 = arith.andi %24, %25 : vector<8x16xi1>
    %27 = arith.extui %26 : vector<8x16xi1> to vector<8x16xi32>
    %28 = arith.sitofp %27 : vector<8x16xi32> to vector<8x16xf32>
    %c0_15 = arith.constant 0 : index
    %c0_16 = arith.constant 0 : index
    %29 = vector.load %arg12[%c0_15, %c0_16] : memref<8x1xf32, #tpu.memory_space<vmem>>, vector<8x1xf32>
    %cst_17 = arith.constant dense<0.000000e+00> : vector<8xf32>
    %30 = vector.multi_reduction <add>, %28, %cst_17 [1] : vector<8x16xf32> to vector<8xf32>
    %31 = vector.shape_cast %30 : vector<8xf32> to vector<8x1xf32>
    %32 = arith.addf %29, %31 : vector<8x1xf32>
    %c0_18 = arith.constant 0 : index
    %c0_19 = arith.constant 0 : index
    %33 = vector.load %arg12[%c0_18, %c0_19] : memref<8x1xf32, #tpu.memory_space<vmem>>, vector<8x1xf32>
    tpu.vector_store %arg12[%c0_18, %c0_19], %32 {strides = array<i32>} : memref<8x1xf32, #tpu.memory_space<vmem>>, vector<8x1xf32>,
    %c0_20 = arith.constant 0 : index
    %c0_21 = arith.constant 0 : index
    %34 = vector.load %arg13[%c0_20, %c0_21] : memref<8x1xf32, #tpu.memory_space<vmem>>, vector<8x1xf32>
    %cst_22 = arith.constant 0.000000e+00 : f32
    %35 = vector.broadcast %cst_22 : f32 to vector<8x16xf32>
    %36 = arith.select %26, %16, %35 : vector<8x16xi1>, vector<8x16xf32>
    %cst_23 = arith.constant dense<0.000000e+00> : vector<8xf32>
    %37 = vector.multi_reduction <add>, %36, %cst_23 [1] : vector<8x16xf32> to vector<8xf32>
    %38 = vector.shape_cast %37 : vector<8xf32> to vector<8x1xf32>
    %39 = arith.addf %34, %38 : vector<8x1xf32>
    %c0_24 = arith.constant 0 : index
    %c0_25 = arith.constant 0 : index
    %40 = vector.load %arg13[%c0_24, %c0_25] : memref<8x1xf32, #tpu.memory_space<vmem>>, vector<8x1xf32>
    tpu.vector_store %arg13[%c0_24, %c0_25], %39 {strides = array<i32>} : memref<8x1xf32, #tpu.memory_space<vmem>>, vector<8x1xf32>,
    %cst_26 = arith.constant -1.000000e+30 : f32
    %41 = vector.shape_cast %19 : vector<1x16xi1> to vector<1x16xi1>
    %42 = vector.broadcast %41 : vector<1x16xi1> to vector<8x16xi1>
    %43 = vector.broadcast %cst_26 : f32 to vector<8x16xf32>
    %44 = arith.select %42, %16, %43 : vector<8x16xi1>, vector<8x16xf32>
    %c0_27 = arith.constant 0 : index
    %c0_28 = arith.constant 0 : index
    %45 = vector.load %arg10[%c0_27, %c0_28] : memref<8x1xf32, #tpu.memory_space<vmem>>, vector<8x1xf32>
    %cst_29 = arith.constant dense<0xFF800000> : vector<8xf32>
    %46 = vector.multi_reduction <maximumf>, %44, %cst_29 [1] : vector<8x16xf32> to vector<8xf32>
    %47 = vector.shape_cast %46 : vector<8xf32> to vector<8x1xf32>
    %48 = arith.maximumf %45, %47 : vector<8x1xf32>
    %c0_30 = arith.constant 0 : index
    %c0_31 = arith.constant 0 : index
    %49 = vector.load %arg10[%c0_30, %c0_31] : memref<8x1xf32, #tpu.memory_space<vmem>>, vector<8x1xf32>
    %50 = arith.subf %49, %48 : vector<8x1xf32>
    %51 = math.exp %50 : vector<8x1xf32>
    %c0_32 = arith.constant 0 : index
    %c0_33 = arith.constant 0 : index
    %52 = vector.load %arg11[%c0_32, %c0_33] : memref<8x1xf32, #tpu.memory_space<vmem>>, vector<8x1xf32>
    %53 = arith.mulf %51, %52 : vector<8x1xf32>
    %54 = vector.broadcast %48 : vector<8x1xf32> to vector<8x16xf32>
    %55 = arith.subf %44, %54 : vector<8x16xf32>
    %56 = math.exp %55 : vector<8x16xf32>
    %cst_34 = arith.constant dense<0.000000e+00> : vector<8xf32>
    %57 = vector.multi_reduction <add>, %56, %cst_34 [1] : vector<8x16xf32> to vector<8xf32>
    %58 = vector.shape_cast %57 : vector<8xf32> to vector<8x1xf32>
    %59 = arith.addf %53, %58 : vector<8x1xf32>
    %c0_35 = arith.constant 0 : index
    %c0_36 = arith.constant 0 : index
    %60 = vector.load %arg11[%c0_35, %c0_36] : memref<8x1xf32, #tpu.memory_space<vmem>>, vector<8x1xf32>
    tpu.vector_store %arg11[%c0_35, %c0_36], %59 {strides = array<i32>} : memref<8x1xf32, #tpu.memory_space<vmem>>, vector<8x1xf32>,
    %c0_37 = arith.constant 0 : index
    %c0_38 = arith.constant 0 : index
    %61 = vector.load %arg10[%c0_37, %c0_38] : memref<8x1xf32, #tpu.memory_space<vmem>>, vector<8x1xf32>
    tpu.vector_store %arg10[%c0_37, %c0_38], %48 {strides = array<i32>} : memref<8x1xf32, #tpu.memory_space<vmem>>, vector<8x1xf32>,
    %c0_i32_39 = arith.constant 0 : i32
    %62 = arith.cmpi eq, %arg1, %c0_i32_39 : i32
    %63 = arith.extui %62 : i1 to i32
    %c0_i32_40 = arith.constant 0 : i32
    %64 = arith.cmpi ne, %63, %c0_i32_40 : i32
    scf.if %64 {
      %c0_41 = arith.constant 0 : index
      %c0_42 = arith.constant 0 : index
      %65 = vector.load %arg12[%c0_41, %c0_42] : memref<8x1xf32, #tpu.memory_space<vmem>>, vector<8x1xf32>
      %c0_43 = arith.constant 0 : index
      %c0_44 = arith.constant 0 : index
      %66 = vector.load %arg10[%c0_43, %c0_44] : memref<8x1xf32, #tpu.memory_space<vmem>>, vector<8x1xf32>
      %c0_45 = arith.constant 0 : index
      %c0_46 = arith.constant 0 : index
      %67 = vector.load %arg11[%c0_45, %c0_46] : memref<8x1xf32, #tpu.memory_space<vmem>>, vector<8x1xf32>
      %68 = math.log %67 : vector<8x1xf32>
      %69 = arith.addf %66, %68 : vector<8x1xf32>
      %c0_47 = arith.constant 0 : index
      %c0_48 = arith.constant 0 : index
      %70 = vector.load %arg13[%c0_47, %c0_48] : memref<8x1xf32, #tpu.memory_space<vmem>>, vector<8x1xf32>
      %71 = arith.mulf %65, %69 : vector<8x1xf32>
      %72 = arith.subf %70, %71 : vector<8x1xf32>
      %cst_49 = arith.constant 1.000000e+00 : f32
      %73 = vector.broadcast %cst_49 : f32 to vector<8x1xf32>
      %74 = arith.maximumf %65, %73 : vector<8x1xf32>
      %75 = arith.divf %72, %74 : vector<8x1xf32>
      %cst_50 = arith.constant 0.000000e+00 : f32
      %76 = vector.broadcast %cst_50 : f32 to vector<8x1xf32>
      %77 = arith.subf %76, %75 : vector<8x1xf32>
      %cst_51 = arith.constant 1.000000e-01 : f32
      %78 = vector.broadcast %cst_51 : f32 to vector<8x1xf32>
      %79 = arith.mulf %77, %78 : vector<8x1xf32>
      %c0_52 = arith.constant 0 : index
      %c0_53 = arith.constant 0 : index
      %80 = vector.load %arg7[%c0_52, %c0_53] : memref<8x1xf32, #tpu.memory_space<vmem>>, vector<8x1xf32>
      tpu.vector_store %arg7[%c0_52, %c0_53], %79 {strides = array<i32>} : memref<8x1xf32, #tpu.memory_space<vmem>>, vector<8x1xf32>,
      %c0_54 = arith.constant 0 : index
      %c0_55 = arith.constant 0 : index
      %81 = vector.load %arg8[%c0_54, %c0_55] : memref<8x1xf32, #tpu.memory_space<vmem>>, vector<8x1xf32>
      tpu.vector_store %arg8[%c0_54, %c0_55], %65 {strides = array<i32>} : memref<8x1xf32, #tpu.memory_space<vmem>>, vector<8x1xf32>,
    } else {
    }
    return
  }
  func.func @transform_0(%arg0: i32, %arg1: i32) -> (i32, i32) {
    %c0_i32 = arith.constant 0 : i32
    %c0_i32_0 = arith.constant 0 : i32
    return %arg0, %c0_i32 : i32, i32
  }
  func.func @transform_1(%arg0: i32, %arg1: i32) -> (i32, i32) {
    %c0_i32 = arith.constant 0 : i32
    %c0_i32_0 = arith.constant 0 : i32
    return %c0_i32, %arg1 : i32, i32
  }
  func.func @transform_2(%arg0: i32, %arg1: i32) -> (i32, i32) {
    %c0_i32 = arith.constant 0 : i32
    %c0_i32_0 = arith.constant 0 : i32
    return %arg0, %c0_i32 : i32, i32
  }
  func.func @transform_3(%arg0: i32, %arg1: i32) -> (i32, i32) {
    %c0_i32 = arith.constant 0 : i32
    %c0_i32_0 = arith.constant 0 : i32
    return %c0_i32, %arg1 : i32, i32
  }
  func.func @transform_4(%arg0: i32, %arg1: i32) -> (i32, i32) {
    %c0_i32 = arith.constant 0 : i32
    %c0_i32_0 = arith.constant 0 : i32
    return %c0_i32, %arg1 : i32, i32
  }
  func.func @transform_5(%arg0: i32, %arg1: i32) -> (i32, i32) {
    %c0_i32 = arith.constant 0 : i32
    %c0_i32_0 = arith.constant 0 : i32
    return %arg0, %c0_i32 : i32, i32
  }
  func.func @transform_6(%arg0: i32, %arg1: i32) -> (i32, i32) {
    %c0_i32 = arith.constant 0 : i32
    %c0_i32_0 = arith.constant 0 : i32
    return %arg0, %c0_i32 : i32, i32
  }
}

</mosaic_0001>

<bundles_post_ra>
// kernel: tpu_custom_call.1
= control target key start
LH: loop header
LB: loop body
LE: loop exit
PB: predicated region body
PF: predicated region fallthrough
CT: control target
= control target key end

     0   :  { %12 = vsyncpa [#allocation8], 0  ;;  %s698_s0 = inlined_call_operand.hbm [shape: f32[8,32], index: 0, kind: input, shape index: {}]   ;;  %s699_s1 = inlined_call_operand.hbm [shape: f32[32,16], index: 1, kind: input, shape index: {}]   ;;  %s700_s2 = inlined_call_operand.hbm [shape: s32[8,1], index: 2, kind: input, shape index: {}]   ;;  %s701_s3 = inlined_call_operand.hbm [shape: s32[1,16], index: 3, kind: input, shape index: {}]   ;;  %s702_s4 = inlined_call_operand.hbm [shape: f32[1,16], index: 4, kind: input, shape index: {}]   ;;  %s703_s5 = inlined_call_operand.hbm [shape: f32[8,1], index: 5, kind: output, shape index: {0}]   ;;  %s704_s6 = inlined_call_operand.hbm [shape: f32[8,1], index: 6, kind: output, shape index: {1}]  }
   0x1   :  { %13 = vsyncpa [#allocation11], 0 }
   0x2   :  { %14 = vsyncpa [#allocation14], 0 }
   0x3   :  { %15 = vsyncpa [#allocation9], 0 }
   0x4   :  { %16 = vsyncpa [#allocation18], 0  ;;  %s537_s21 = smov [#allocation10]   ;;  %s373_s25 = scalar_lea.hbm %s699_s1, 512 }
   0x5   :  { %s32_s22 = sshll.u32 %s537_s21, 4  ;;  %p374_p0 = scmp.ne.s32.totalorder %s699_s1, %s373_s25  ;;  %s33_s22 = int_to_ptr.vmem [resolvable:$true] %s32_s22 }
   0x6   :  { %p377_p1 = scmp.lt.u32.totalorder %s373_s25, %s699_s1 }
   0x8   :  { %p379_p2 = pnand %p377_p1, %p374_p0 }
   0xa   :  { %382 = shalt.err (!%p379_p2)
}
   0xb   :  { %s383_s30 = scalar_lea.vmem %s33_s22, 512  ;;  %p388_p4 = scmp.lt.s32.totalorder %s33_s22, %s33_s22 }
   0xc   :  { %p384_p3 = scmp.ne.s32.totalorder %s33_s22, %s383_s30  ;;  %p389_p5 = scmp.lt.s32.totalorder %s383_s30, %s383_s30 }
   0xe   :  { %p390_p6 = por %p389_p5, %p388_p4 }
  0x10   :  { %p391_p7 = pnand %p390_p6, %p384_p3 }
  0x12   :  { %394 = shalt.err (!%p391_p7)
}
  0x13   :  { %s538_s7 = smov 128   ;;  %s539_s8 = smov 8  }
  0x14   :  { %38 = dma.hbm_to_vmem [thread:$0]  %s699_s1, 512, %s33_s22, [#allocation11], %s538_s7, %s538_s7, %s539_s8  }
  0x15   :  { %s540_s11 = smov [#allocation13]   ;;  %s541_s13 = smov [#allocation7]  }
  0x16   :  { %s55_s12 = sshll.u32 %s540_s11, 4  ;;  %s23_s14 = sshll.u32 %s541_s13, 4  ;;  %s56_s12 = int_to_ptr.vmem [resolvable:$true] %s55_s12  ;;  %s24_s14 = int_to_ptr.vmem [resolvable:$true] %s23_s14 }
  0x17   :  { %s395_s17 = scalar_lea.hbm %s701_s3, 16 }
  0x18   :  { %p396_p8 = scmp.ne.s32.totalorder %s701_s3, %s395_s17  ;;  %p399_p9 = scmp.lt.u32.totalorder %s395_s17, %s701_s3 }
  0x1a   :  { %p401_p10 = pnand %p399_p9, %p396_p8 }
  0x1c   :  { %404 = shalt.err (!%p401_p10)
}
  0x1d   :  { %s405_s1 = scalar_lea.vmem %s56_s12, 16  ;;  %s409_s22 = scalar_lea.vmem %s56_s12, 32 }
  0x1e   :  { %p406_p11 = scmp.ne.s32.totalorder %s56_s12, %s405_s1  ;;  %p410_p12 = scmp.lt.s32.totalorder %s56_s12, %s56_s12 }
  0x1f   :  { %p411_p13 = scmp.lt.s32.totalorder %s409_s22, %s405_s1 }
  0x21   :  { %p412_p0 = por %p411_p13, %p410_p12 }
  0x23   :  { %p413_p1 = pnand %p412_p0, %p406_p11 }
  0x25   :  { %416 = shalt.err (!%p413_p1)
}
  0x26   :  { %58 = dma.hbm_to_vmem [thread:$0]  %s701_s3, 16, %s56_s12, [#allocation14]  }
  0x27   :  { %s417_s27 = scalar_lea.hbm %s698_s0, 128 }
  0x28   :  { %p418_p2 = scmp.ne.s32.totalorder %s698_s0, %s417_s27  ;;  %p421_p3 = scmp.lt.u32.totalorder %s417_s27, %s698_s0 }
  0x2a   :  { %p423_p4 = pnand %p421_p3, %p418_p2 }
  0x2c   :  { %426 = shalt.err (!%p423_p4)
}
  0x2d   :  { %s427_s8 = scalar_lea.vmem %s24_s14, 128  ;;  %p432_p6 = scmp.lt.s32.totalorder %s24_s14, %s24_s14 }
  0x2e   :  { %p428_p5 = scmp.ne.s32.totalorder %s24_s14, %s427_s8  ;;  %p433_p7 = scmp.lt.s32.totalorder %s427_s8, %s427_s8 }
  0x30   :  { %p434_p8 = por %p433_p7, %p432_p6 }
  0x32   :  { %p435_p9 = pnand %p434_p8, %p428_p5 }
  0x34   :  { %438 = shalt.err (!%p435_p9)
}
  0x35   :  { %26 = dma.hbm_to_vmem [thread:$0]  %s698_s0, 128, %s24_s14, [#allocation8]  }
  0x36   :  { %s542_s10 = smov [#allocation12]   ;;  %s543_s12 = smov [#allocation15]  }
  0x37   :  { %s45_s11 = sshll.u32 %s542_s10, 4  ;;  %s65_s13 = sshll.u32 %s543_s12, 4  ;;  %s46_s11 = int_to_ptr.vmem [resolvable:$true] %s45_s11  ;;  %s66_s13 = int_to_ptr.vmem [resolvable:$true] %s65_s13 }
  0x38   :  { %s439_s17 = scalar_lea.hbm %s700_s2, 128 }
  0x39   :  { %p440_p10 = scmp.ne.s32.totalorder %s700_s2, %s439_s17  ;;  %p443_p11 = scmp.lt.u32.totalorder %s439_s17, %s700_s2 }
  0x3b   :  { %p445_p12 = pnand %p443_p11, %p440_p10 }
  0x3d   :  { %448 = shalt.err (!%p445_p12)
}
  0x3e   :  { %s449_s0 = scalar_lea.vmem %s46_s11, 128  ;;  %p454_p0 = scmp.lt.s32.totalorder %s46_s11, %s46_s11 }
  0x3f   :  { %p450_p13 = scmp.ne.s32.totalorder %s46_s11, %s449_s0  ;;  %p455_p1 = scmp.lt.s32.totalorder %s449_s0, %s449_s0 }
  0x41   :  { %p456_p2 = por %p455_p1, %p454_p0 }
  0x43   :  { %p457_p3 = pnand %p456_p2, %p450_p13 }
  0x45   :  { %460 = shalt.err (!%p457_p3)
}
  0x46   :  { %48 = dma.hbm_to_vmem [thread:$0]  %s700_s2, 128, %s46_s11, [#allocation11]  }
  0x47   :  { %s461_s24 = scalar_lea.hbm %s702_s4, 16 }
  0x48   :  { %p462_p4 = scmp.ne.s32.totalorder %s702_s4, %s461_s24  ;;  %p465_p5 = scmp.lt.u32.totalorder %s461_s24, %s702_s4 }
  0x4a   :  { %p467_p6 = pnand %p465_p5, %p462_p4 }
  0x4c   :  { %470 = shalt.err (!%p467_p6)
}
  0x4d   :  { %s471_s29 = scalar_lea.vmem %s66_s13, 16  ;;  %s475_s30 = scalar_lea.vmem %s66_s13, 32 }
  0x4e   :  { %p472_p7 = scmp.ne.s32.totalorder %s66_s13, %s471_s29  ;;  %p476_p8 = scmp.lt.s32.totalorder %s66_s13, %s66_s13 }
  0x4f   :  { %p477_p9 = scmp.lt.s32.totalorder %s475_s30, %s471_s29 }
  0x51   :  { %p478_p10 = por %p477_p9, %p476_p8 }
  0x53   :  { %p479_p11 = pnand %p478_p10, %p472_p7 }
  0x55   :  { %482 = shalt.err (!%p479_p11)
}
  0x56   :  { %68 = dma.hbm_to_vmem [thread:$0]  %s702_s4, 16, %s66_s13, [#allocation14]  }
  0x57   :  { %527 = dma.done.wait [#allocation8], 128  }
  0x58   :  { %528 = vsyncadd [#allocation8], 4294967168 }
  0x59   :  { %529 = dma.done.wait [#allocation11], 640  }
  0x5a   :  { %530 = vsyncadd [#allocation11], 4294966656 }
  0x5b   :  { %531 = dma.done.wait [#allocation14], 32  }
  0x5c   :  { %532 = vsyncadd [#allocation14], 4294967264  ;;  %v544_v0 = vmov 0.0|0.0   ;;  %vm97_vm0 = vcmask 7168   ;;  %v545_v1 = vmov 0.0   ;;  %vm546_vm1 = vmmov 0  }
  0x5d   :  { %339 = vmatprep.subr.bf16.mxu0 %v544_v0  ;;  %100 = vst.msk [vmem:[#allocation4] sm:$0xff] %vm97_vm0, %v545_v1  ;;  %101 = vst.msk [vmem:[#allocation5] sm:$0xff] %vm97_vm0, %v545_v1  ;;  %336 = vmatprep.mubr.msk.f32.mxu0 %vm546_vm1, %v545_v1  ;;  %v88_v2 = vld [vmem:[#allocation7] sm:$0xff]  ;;  %vm90_vm2 = vcmask 261120   ;;  %v103_v3 = vld [vmem:[#allocation10] sm:$0xff]  ;;  %vm111_vm3 = vcmask 130048   ;;  %v223_v38 = vlaneseq }
  0x5e   :  { %102 = vst.msk [vmem:[#allocation6] sm:$0xff] %vm97_vm0, %v545_v1  ;;  %v104_v4 = vld [vmem:[#allocation10 + $0x8] sm:$0xff]  ;;  %v89_v5 = vmul.f32 %v88_v2, %v88_v2  ;;  %v107_v6 = vmul.f32 %v103_v3, %v103_v3  ;;  %v105_v9 = vld [vmem:[#allocation10 + $0x10] sm:$0xff]  ;;  %v106_v10 = vld [vmem:[#allocation10 + $0x18] sm:$0xff]  ;;  %v547_v22 = vmov 0   ;;  %s549_s4 = smov [#allocation17]  }
  0x5f   :  { %v108_v7 = vmul.f32 %v104_v4, %v104_v4  ;;  %v340_v8 = vpack.c.bf16 %v104_v4, %v103_v3  ;;  %v109_v11 = vmul.f32 %v105_v9, %v105_v9  ;;  %v110_v12 = vmul.f32 %v106_v10, %v106_v10  ;;  %359 = vset.pattern.permute.xlu0 %v547_v22  ;;  %v210_v39 = vld [vmem:[#allocation15] sm:$0x1]  ;;  %v212_v54 = vld [vmem:[#allocation12] sm:$0xff]  ;;  %v321_v57 = vld [vmem:[#allocation13] ss:$0 sm:$0xff]  ;;  %s305_s8 = sshll.u32 %s549_s4, 4  ;;  %s306_s8 = int_to_ptr.vmem [resolvable:$true] %s305_s8 }
  0x60   :  { %v91_v13 = vsel %vm90_vm2, %v89_v5, 0.0  ;;  %v112_v14 = vsel %vm111_vm3, %v107_v6, 0.0  ;;  %v343_v16 = vpack.c.bf16 %v106_v10, %v105_v9  ;;  %360 = vset.pattern.permute.xlu1 %v547_v22  ;;  %v548_v28 = vmov -1e+30   ;;  %s483_s3 = scalar_lea.vmem %s306_s8, 128  ;;  %p488_p13 = scmp.lt.s32.totalorder %s306_s8, %s306_s8 }
  0x61   :  { %v113_v15 = vsel %vm111_vm3, %v108_v7, 0.0  ;;  %341 = vmatpush3.bf16.msra.mxu0 %v340_v8  ;;  %92 = vadd.xlane.f32.xlu0 %v91_v13  ;;  %v115_v18 = vsel %vm111_vm3, %v109_v11, 0.0  ;;  %v117_v19 = vsel %vm111_vm3, %v110_v12, 0.0  ;;  %99 = vst.msk [vmem:[#allocation3] sm:$0xff] %vm97_vm0, %v548_v28  ;;  %v224_v40 = vshrl.u32 %v223_v38, 7  ;;  %p484_p12 = scmp.ne.s32.totalorder %s306_s8, %s483_s3  ;;  %p489_p0 = scmp.lt.s32.totalorder %s483_s3, %s483_s3 }
  0x62   :  { %v114_v17 = vadd.f32 %v113_v15, %v112_v14  ;;  %342 = vmatprep.subr.bf16.mxu0 %v544_v0  ;;  %vm211_vm4 = vcmp.gt.f32.partialorder %v210_v39, 0.5 }
  0x63   :  { %v225_v41 = vsub.s32 0, %v224_v40  ;;  %v222_v42 = vsel %vm211_vm4, 1, %v547_v22  ;;  %p490_p1 = por %p489_p0, %p488_p13 }
  0x64   :  { %v116_v20 = vadd.f32 %v115_v18, %v114_v17  ;;  %v231_v4 = vld [vmem:[#allocation5] sm:$0xff] }
  0x65   :  { %344 = vmatpush3.bf16.msra.mxu0 %v343_v16  ;;  %v226_v43 = vrot.slane %v222_v42, %v225_v41  ;;  %v238_v11 = vld [vmem:[#allocation6] sm:$0xff]  ;;  %p491_p2 = pnand %p490_p1, %p484_p12 }
  0x66   :  { %v118_v21 = vadd.f32 %v117_v19, %v116_v20 }
  0x67   :  { %vm227_vm5 = vcmp.eq.s32.totalorder %v226_v43, 1 }
  0x68   :  { %337 = vmatmul.mubr.msk.f32.vlgmr.msra.gmra.mrb[0].mxu0 %vm90_vm2, %v88_v2  ;;  %v119_v31 = vrot.slane %v118_v21, 4  ;;  %v246_v50 = vld [vmem:[#allocation3] sm:$0xff] }
  0x6a   :  { %v120_v32 = vadd.f32 %v119_v31, %v118_v21 }
  0x6c   :  { %v121_v33 = vrot.slane %v120_v32, 2 }
  0x6e   :  { %v122_v34 = vadd.f32 %v121_v33, %v120_v32 }
  0x70   :  { %v123_v35 = vrot.slane %v122_v34, 1 }
  0x72   :  { %v124_v36 = vadd.f32 %v123_v35, %v122_v34 }
  0x74   :  { %v125_v37 = vmax.f32 %v124_v36, 1e-24 }
  0xee   :  { %v93_v23 = vpop.xlane.xlu0 %92 }
  0xef   :  { %v94_v24 = vmax.f32 %v93_v23, 1e-24 }
  0xf1   :  { %361 = vrsqrt.f32 %v94_v24 }
  0xf2   :  { %363 = vrsqrt.f32 %v125_v37 }
  0xfb   :  { %v362_v25 = vpop.eup %361 }
  0xfc   :  { %v96_v26 = vmul.f32 10.0, %v362_v25  ;;  %v364_v44 = vpop.eup %363 }
  0xfe   :  { %98 = vst.msk [vmem:[#allocation2] sm:$0xff] %vm97_vm0, %v96_v26 }
 0x105   :  { %v202_v27 = vld [vmem:[#allocation2] sm:$0xff] }
 0x106   :  { %205 = vperm.xlu0 %359, %v202_v27  }
 0x13b   :  { %v198_v29 = vpop.f32.mrb[0].mxu0 }
 0x13c   :  { %v338_v30 = vpop.f32.mrb[1].mxu0 }
 0x185   :  { %v206_v45 = vpop.permute.xlu0 %205 }
 0x186   :  { %v208_v46 = vmul.f32 %v206_v45, %v198_v29 }
 0x188   :  { %v209_v47 = vmul.f32 %v364_v44, %v208_v46 }
 0x18a   :  { %v245_v48 = vsel %vm227_vm5, %v209_v47, -1e+30 }
 0x18b   :  { %v247_v49 = vsel %vm111_vm3, %v245_v48, -inf }
 0x18c   :  { %248 = vmax.xlane.f32.xlu1 %v247_v49 }
 0x219   :  { %v249_v51 = vpop.xlane.xlu1 %248 }
 0x21a   :  { %v250_v52 = vmax.f32 %v246_v50, %v249_v51 }
 0x21c   :  { %v251_v53 = vsub.f32 %v246_v50, %v250_v52  ;;  %269 = vst.msk [vmem:[#allocation3] sm:$0xff] %vm97_vm0, %v250_v52  ;;  %258 = vperm.xlu1 %360, %v250_v52  }
 0x21e   :  { %v252_v3 = vmul.f32 1.442695, %v251_v53 }
 0x220   :  { %215 = vperm.xlu1 %360, %v212_v54  }
 0x29b   :  { %v259_v55 = vpop.permute.xlu1 %258 }
 0x29c   :  { %v261_v56 = vsub.f32 %v245_v48, %v259_v55 }
 0x29e   :  { %v262_v58 = vmul.f32 1.442695, %v261_v56 }
 0x29f   :  { %v216_v59 = vpop.permute.xlu1 %215 }
 0x2a0   :  { %365 = vpow2.f32 %v262_v58  ;;  %vm221_vm6 = vcmp.eq.s32.totalorder %v216_v59, %v321_v57 }
 0x2a1   :  { %vm228_vm7 = vmand %vm221_vm6, %vm227_vm5  ;;  %367 = vpow2.f32 %v252_v3 }
 0x2a2   :  { %v322_v60 = vsel %vm228_vm7, 1.0, %v545_v1  ;;  %v239_v0 = vsel %vm228_vm7, %v209_v47, 0.0  ;;  %v254_v1 = vld [vmem:[#allocation4] sm:$0xff] }
 0x2a3   :  { %v232_v61 = vsel %vm111_vm3, %v322_v60, 0.0  ;;  %v240_v2 = vsel %vm111_vm3, %v239_v0, 0.0 }
 0x2a4   :  { %233 = vadd.xlane.f32.xlu0 %v232_v61 }
 0x2aa   :  { %v366_v62 = vpop.eup %365 }
 0x2ab   :  { %v264_v63 = vsel %vm111_vm3, %v366_v62, 0.0  ;;  %v368_v7 = vpop.eup %367 }
 0x2ac   :  { %265 = vadd.xlane.f32.xlu1 %v264_v63  ;;  %v255_v8 = vmul.f32 %v368_v7, %v254_v1 }
 0x2b0   :  { %241 = vadd.xlane.f32.xlu1 %v240_v2 }
 0x331   :  { %v234_v5 = vpop.xlane.xlu0 %233 }
 0x332   :  { %v235_v6 = vadd.f32 %v234_v5, %v231_v4 }
 0x334   :  { %237 = vst.msk [vmem:[#allocation5] sm:$0xff] %vm97_vm0, %v235_v6 }
 0x339   :  { %v266_v9 = vpop.xlane.xlu1 %265 }
 0x33a   :  { %v267_v10 = vadd.f32 %v266_v9, %v255_v8 }
 0x33b   :  { %v273_v12 = vld [vmem:[#allocation5] sm:$0xff] }
 0x33c   :  { %268 = vst.msk [vmem:[#allocation4] sm:$0xff] %vm97_vm0, %v267_v10  ;;  %288 = vst.msk [vmem:[#allocation17] sm:$0xff] %vm97_vm0, %v273_v12 }
 0x33d   :  { %v242_v13 = vpop.xlane.xlu1 %241 }
 0x33e   :  { %494 = shalt.err (!%p491_p2)
}
 0x33f   :  { %s495_s11 = scalar_lea.hbm %s704_s6, 128 }
 0x340   :  { %p496_p3 = scmp.ne.s32.totalorder %s704_s6, %s495_s11  ;;  %p499_p4 = scmp.lt.u32.totalorder %s495_s11, %s704_s6 }
 0x342   :  { %p501_p5 = pnand %p499_p4, %p496_p3 }
 0x344   :  { %504 = shalt.err (!%p501_p5)
}
 0x345   :  { %308 = dma.vmem_to_hbm [thread:$0]  %s306_s8, 128, %s704_s6, [#allocation18]   ;;  %v243_v14 = vadd.f32 %v242_v13, %v238_v11  ;;  %v275_v15 = vld [vmem:[#allocation4] sm:$0xff]  ;;  %v282_v16 = vmax.f32 %v273_v12, 1.0  ;;  %v274_v19 = vld [vmem:[#allocation3] sm:$0xff] }
 0x346   :  { %369 = vlog2.f32 %v275_v15  ;;  %s550_s19 = smov [#allocation16]  }
 0x347   :  { %244 = vst.msk [vmem:[#allocation6] sm:$0xff] %vm97_vm0, %v243_v14  ;;  %371 = vrcp.f32 %v282_v16  ;;  %s295_s20 = sshll.u32 %s550_s19, 4  ;;  %s296_s20 = int_to_ptr.vmem [resolvable:$true] %s295_s20 }
 0x348   :  { %s505_s6 = scalar_lea.vmem %s296_s20, 128  ;;  %p510_p7 = scmp.lt.s32.totalorder %s296_s20, %s296_s20 }
 0x349   :  { %p506_p6 = scmp.ne.s32.totalorder %s296_s20, %s505_s6  ;;  %p511_p8 = scmp.lt.s32.totalorder %s505_s6, %s505_s6 }
 0x34b   :  { %p512_p9 = por %p511_p8, %p510_p7 }
 0x34d   :  { %p513_p10 = pnand %p512_p9, %p506_p6 }
 0x34e   :  { %v279_v22 = vld [vmem:[#allocation6] sm:$0xff] }
 0x350   :  { %v370_v17 = vpop.eup %369 }
 0x351   :  { %v277_v18 = vmul.f32 0.6931472, %v370_v17  ;;  %v372_v24 = vpop.eup %371 }
 0x353   :  { %v278_v20 = vadd.f32 %v277_v18, %v274_v19 }
 0x355   :  { %v280_v21 = vmul.f32 %v278_v20, %v273_v12 }
 0x357   :  { %v281_v23 = vsub.f32 %v279_v22, %v280_v21 }
 0x359   :  { %v284_v25 = vmul.f32 %v372_v24, %v281_v23 }
 0x35b   :  { %v285_v26 = vsub.f32 0.0, %v284_v25 }
 0x35d   :  { %v286_v27 = vmul.f32 0.1, %v285_v26 }
 0x35f   :  { %287 = vst.msk [vmem:[#allocation16] sm:$0xff] %vm97_vm0, %v286_v27 }
 0x360   :  { %516 = shalt.err (!%p513_p10)
}
 0x361   :  { %s517_s14 = scalar_lea.hbm %s703_s5, 128 }
 0x362   :  { %p518_p11 = scmp.ne.s32.totalorder %s703_s5, %s517_s14  ;;  %p521_p12 = scmp.lt.u32.totalorder %s517_s14, %s703_s5 }
 0x364   :  { %p523_p13 = pnand %p521_p12, %p518_p11 }
 0x366   :  { %526 = shalt.err (!%p523_p13)
}
 0x367   :  { %298 = dma.vmem_to_hbm [thread:$0]  %s296_s20, 128, %s703_s5, [#allocation9]  }
 0x368   :  { %533 = dma.done.wait [#allocation9], 128  }
 0x369   :  { %534 = vsyncadd [#allocation9], 4294967168 }
 0x36a   :  { %535 = dma.done.wait [#allocation18], 128  }
 0x36b   :  { %536 = vsyncadd [#allocation18], 4294967168 }
 0x36c   :  { %315 = vsyncpa [#allocation8], 1 }
 0x36d   :  { %316 = vsyncpa [#allocation11], 1 }
 0x36e   :  { %317 = vsyncpa [#allocation14], 1 }
 0x36f   :  { %318 = vsyncpa [#allocation9], 1 }
 0x370   :  { %319 = vsyncpa [#allocation18], 1 }

</bundles_post_ra>
